<compile_context>
chip_gen: v7x
topology: tpu7x:2x2x1
jax: 0.10.0
libtpu: 0.0.40
codegen_flags: <defaults>
</compile_context>

<pallas_src>
import functools

import jax
import jax.numpy as jnp
from jax import lax
from jax.experimental import pallas as pl
from jax.experimental.pallas import tpu as pltpu

EPS = 1e-5
LANES = 128


def _vmem_budget_bytes():
    """Generation-aware scoped-VMEM budget with headroom for Mosaic scratch."""
    try:
        cap = int(pltpu.get_tpu_info().vmem_capacity_bytes)
    except Exception:
        cap = 0
    if cap <= 0:
        cap = 64 << 20                       # conservative default (v7x-sized)
    return cap - max(cap // 8, 8 << 20)      # 64 MiB -> 56 MiB, 128 MiB -> 112 MiB


def _bn_resident_kernel(x_ref, gamma_ref, beta_ref, o_ref, *, fold, row_chunk):
    """Single-pass BN over one channel stripe with all Nf rows resident in VMEM.

    x_ref/o_ref: (Nf, TW); gamma_ref/beta_ref: (1, TW).
    If fold > 1, the TW(=128) columns pack `fold` groups of C = TW//fold
    channels (consecutive logical rows folded into one lane-dense row), so the
    per-channel stats fold the groups back together.
    Stats are accumulated chunk-by-chunk in f32 (no full-stripe f32 temp).
    """
    nf, w = x_ref.shape
    c = w // fold
    n = nf * fold
    inv_n = 1.0 / float(n)

    n_full = nf // row_chunk
    rem = nf - n_full * row_chunk
    unroll = n_full <= 8

    def fold_cols(v):
        # (1, w) column sums -> per-channel sums, tiled back to (1, w).
        if fold == 1:
            return v
        s = v[:, 0:c]
        for g in range(1, fold):
            s = s + v[:, g * c:(g + 1) * c]
        return jnp.concatenate([s] * fold, axis=1)

    def load_chunk(start, size):
        return x_ref[pl.ds(start, size), :].astype(jnp.float32)

    # ---- pass 1: per-channel sum (chunked, explicit f32 accumulation) ------
    def sum_body(i, acc):
        start = pl.multiple_of(i * row_chunk, row_chunk)
        return acc + jnp.sum(load_chunk(start, row_chunk), axis=0,
                             keepdims=True, dtype=jnp.float32)

    s = lax.fori_loop(0, n_full, sum_body, jnp.zeros((1, w), jnp.float32),
                      unroll=unroll)
    if rem:
        s = s + jnp.sum(load_chunk(n_full * row_chunk, rem), axis=0,
                        keepdims=True, dtype=jnp.float32)
    mean = fold_cols(s) * inv_n

    # ---- pass 2: centered, biased variance (chunked, f32) ------------------
    def var_body(i, acc):
        start = pl.multiple_of(i * row_chunk, row_chunk)
        xc = load_chunk(start, row_chunk) - mean
        return acc + jnp.sum(xc * xc, axis=0, keepdims=True, dtype=jnp.float32)

    q = lax.fori_loop(0, n_full, var_body, jnp.zeros((1, w), jnp.float32),
                      unroll=unroll)
    if rem:
        xc = load_chunk(n_full * row_chunk, rem) - mean
        q = q + jnp.sum(xc * xc, axis=0, keepdims=True, dtype=jnp.float32)
    var = fold_cols(q) * inv_n

    # ---- fold normalize + affine into one scale/shift per lane -------------
    inv_std = lax.rsqrt(var + EPS)                       # EUP
    scale = gamma_ref[...] * inv_std                     # (1, w)
    shift = beta_ref[...] - mean * scale                 # (1, w)

    # ---- pass 3: y = x * scale + shift, chunked stores ---------------------
    def out_body(i, carry):
        start = pl.multiple_of(i * row_chunk, row_chunk)
        xi = load_chunk(start, row_chunk)
        o_ref[pl.ds(start, row_chunk), :] = (xi * scale + shift).astype(o_ref.dtype)
        return carry

    lax.fori_loop(0, n_full, out_body, 0, unroll=unroll)
    if rem:
        start = n_full * row_chunk
        xi = load_chunk(start, rem)
        o_ref[pl.ds(start, rem), :] = (xi * scale + shift).astype(o_ref.dtype)


def _bn_stats_kernel(x_ref, sum_ref, sq_ref, *, tr, nf_total):
    """N-tiled accumulation of per-column sum and sum-of-squares (f32)."""
    i = pl.program_id(0)

    @pl.when(i == 0)
    def _():
        sum_ref[...] = jnp.zeros_like(sum_ref)
        sq_ref[...] = jnp.zeros_like(sq_ref)

    x = x_ref[...].astype(jnp.float32)                               # (tr, W)
    # Mask rows past the end of the array (boundary-tile content is undefined).
    rid = i * tr + lax.broadcasted_iota(jnp.int32, x.shape, 0)
    x = jnp.where(rid < nf_total, x, 0.0)
    sum_ref[...] += jnp.sum(x, axis=0, keepdims=True, dtype=jnp.float32)
    sq_ref[...] += jnp.sum(x * x, axis=0, keepdims=True, dtype=jnp.float32)


def _bn_normalize_kernel(x_ref, scale_ref, shift_ref, o_ref):
    """N-tiled y = x * scale + shift (scale/shift precomputed per channel)."""
    x = x_ref[...].astype(jnp.float32)
    o_ref[...] = (x * scale_ref[...] + shift_ref[...]).astype(o_ref.dtype)


def temporal_batch_norm(x, gamma, beta, *, force_two_pass=False, row_tile=None):
    """Training-mode BatchNorm1d forward.  x: (N, C); gamma, beta: (C,)."""
    N, C = x.shape
    out_dtype = x.dtype
    itemsize = x.dtype.itemsize

    # --- lane-dense layout: fold rows so the last dim fills 128 lanes -------
    fold = 1
    if C < LANES and LANES % C == 0 and N % (LANES // C) == 0:
        fold = LANES // C
    W = C * fold
    Nf = N // fold
    x_l = x.reshape(Nf, W)            # pure row-major reshape, no HBM copy

    gamma_f = gamma.astype(jnp.float32)
    beta_f = beta.astype(jnp.float32)

    budget = _vmem_budget_bytes()

    # --- resident single-pass path: pick a channel-tile width that fits -----
    tile_w = None
    if not force_two_pass:
        cand_list = []
        if W % LANES == 0:
            for cand in (512, 256, LANES):
                if W % cand == 0:
                    cand_list.append((cand, W // cand))
        ordered = ([c for c, t in cand_list if t >= 4]        # >=2 blocks per TC
                   + [c for c, t in cand_list if 2 <= t < 4]  # >=1 block per TC
                   + [W])                                      # single full-width block
        for cand in ordered:
            # 2x double-buffered input + 2x double-buffered output stripes + slack
            need = 4 * Nf * cand * itemsize + (2 << 20)
            if need <= budget:
                tile_w = cand
                break

    if tile_w is not None:
        # ------------------- single-pass (stripe-resident) ------------------
        assert fold == 1 or tile_w == W
        n_tiles = W // tile_w
        row_chunk = Nf if Nf <= 256 else 256
        g_l = jnp.tile(gamma_f, fold).reshape(1, W)
        b_l = jnp.tile(beta_f, fold).reshape(1, W)

        kernel = functools.partial(_bn_resident_kernel, fold=fold,
                                   row_chunk=row_chunk)
        out = pl.pallas_call(
            kernel,
            out_shape=jax.ShapeDtypeStruct((Nf, W), out_dtype),
            grid=(n_tiles,),
            in_specs=[
                pl.BlockSpec((Nf, tile_w), lambda j: (0, j)),
                pl.BlockSpec((1, tile_w), lambda j: (0, j)),
                pl.BlockSpec((1, tile_w), lambda j: (0, j)),
            ],
            out_specs=pl.BlockSpec((Nf, tile_w), lambda j: (0, j)),
            compiler_params=pltpu.CompilerParams(
                dimension_semantics=("parallel",),
                vmem_limit_bytes=budget,
            ),
            cost_estimate=pl.CostEstimate(
                flops=8 * N * C, transcendentals=C,
                bytes_accessed=2 * N * C * itemsize),
        )(x_l, g_l, b_l)
        return out.reshape(N, C)

    # ----------------- two-pass fallback (stats + normalize) ----------------
    # Pass A: N-tiled accumulation of per-column sum / sumsq (f32).
    # Pass B: N-tiled y = x*scale + shift.  ~1.5x the HBM traffic of the
    # resident path, but works for any N and both grids pipeline cleanly.
    if row_tile is None:
        block_budget = max(256 << 10, min(8 << 20, budget // 8))
        row_tile = max(8, (block_budget // (W * itemsize)) // 8 * 8)
    if row_tile >= Nf:
        row_tile = Nf                        # single full-height block
    else:
        row_tile = max(8, (row_tile // 8) * 8)
    n_row_tiles = pl.cdiv(Nf, row_tile)

    sums, sqs = pl.pallas_call(
        functools.partial(_bn_stats_kernel, tr=row_tile, nf_total=Nf),
        out_shape=(jax.ShapeDtypeStruct((1, W), jnp.float32),
                   jax.ShapeDtypeStruct((1, W), jnp.float32)),
        grid=(n_row_tiles,),
        in_specs=[pl.BlockSpec((row_tile, W), lambda i: (i, 0))],
        out_specs=(pl.BlockSpec((1, W), lambda i: (0, 0)),
                   pl.BlockSpec((1, W), lambda i: (0, 0))),
        compiler_params=pltpu.CompilerParams(
            dimension_semantics=("arbitrary",),
            vmem_limit_bytes=budget,
        ),
        cost_estimate=pl.CostEstimate(
            flops=3 * N * C, transcendentals=0,
            bytes_accessed=N * C * itemsize),
    )(x_l)
    # TODO(synk): split the stats grid into per-TensorCore partial sums
    # (CORE_PARALLEL / VMEM_SHARED) so both v7x cores also work during pass A.

    # Tiny (C,)-sized math in the wrapper: fold groups back to channels and
    # build one scale/shift per channel (E[x^2] - mean^2 with f32 accumulation).
    ssum = jnp.sum(sums.reshape(fold, C), axis=0)
    ssq = jnp.sum(sqs.reshape(fold, C), axis=0)
    mean = ssum / N
    var = jnp.maximum(ssq / N - mean * mean, 0.0)        # biased variance
    inv_std = lax.rsqrt(var + EPS)
    scale_c = gamma_f * inv_std
    shift_c = beta_f - mean * scale_c
    scale_l = jnp.tile(scale_c, fold).reshape(1, W)
    shift_l = jnp.tile(shift_c, fold).reshape(1, W)

    out = pl.pallas_call(
        _bn_normalize_kernel,
        out_shape=jax.ShapeDtypeStruct((Nf, W), out_dtype),
        grid=(n_row_tiles,),
        in_specs=[
            pl.BlockSpec((row_tile, W), lambda i: (i, 0)),
            pl.BlockSpec((1, W), lambda i: (0, 0)),
            pl.BlockSpec((1, W), lambda i: (0, 0)),
        ],
        out_specs=pl.BlockSpec((row_tile, W), lambda i: (i, 0)),
        compiler_params=pltpu.CompilerParams(
            dimension_semantics=("parallel",),
            vmem_limit_bytes=budget,
        ),
        cost_estimate=pl.CostEstimate(
            flops=2 * N * C, transcendentals=0,
            bytes_accessed=2 * N * C * itemsize),
    )(x_l, scale_l, shift_l)
    return out.reshape(N, C)


def temporal_batch_norm_ref(x, gamma, beta):
    mean = jnp.mean(x, axis=0, keepdims=True)
    var = jnp.mean((x - mean) ** 2, axis=0, keepdims=True)
    return (x - mean) * lax.rsqrt(var + EPS) * gamma[None, :] + beta[None, :]


# TODO(synk): PyTorch training-mode BatchNorm1d also updates running_mean /
# running_var buffers (unbiased variance, momentum); only the forward output is
# produced here.

if __name__ == "__main__":
    key = jax.random.PRNGKey(0)

    # (N, C, random_affine, force_two_pass, row_tile)
    cases = [
        (64, 32, False, False, None),   # module-like toy size; fold=4 lane packing
        (16, 48, True, False, None),    # C not a multiple of 128 -> full-width block
        (32, 256, True, False, None),   # 2 channel tiles, "parallel" grid
        (1000, 96, True, True, 128),    # two-pass path: 8 row tiles + boundary mask
        (512, 32, True, True, 32),      # two-pass path with fold=4 packing
    ]

    ok = True
    for i, (N, C, rand_affine, force_tp, rtile) in enumerate(cases):
        kx = jax.random.fold_in(key, i)
        x = jax.random.normal(kx, (N, C), dtype=jnp.float32)
        if rand_affine:
            kg, kb = jax.random.split(jax.random.fold_in(key, 100 + i))
            gamma = jax.random.normal(kg, (C,), dtype=jnp.float32)
            beta = jax.random.normal(kb, (C,), dtype=jnp.float32)
        else:
            gamma = jnp.ones((C,), dtype=jnp.float32)    # bn.weight default
            beta = jnp.zeros((C,), dtype=jnp.float32)    # bn.bias default

        out = jax.block_until_ready(
            temporal_batch_norm(x, gamma, beta,
                                force_two_pass=force_tp, row_tile=rtile))
        ref = temporal_batch_norm_ref(x, gamma, beta)
        ok = ok and out.shape == (N, C)
        ok = ok and bool(jnp.allclose(out, ref, atol=1e-4, rtol=1e-4))

    assert ok
    print("KERNEL_OK")
</pallas_src>

<mosaic_0001>
module attributes {stable_mosaic.version = 11 : i64} {
  func.func @_bn_resident_kernel(%arg0: i32, %arg1: memref<16x128xf32, #tpu.memory_space<vmem>>, %arg2: memref<1x128xf32, #tpu.memory_space<vmem>>, %arg3: memref<1x128xf32, #tpu.memory_space<vmem>>, %arg4: memref<16x128xf32, #tpu.memory_space<vmem>>) attributes {dimension_semantics = [#tpu.dimension_semantics<parallel>], iteration_bounds = array<i64: 1>, scalar_prefetch = 0 : i64, scratch_operands = 0 : i64, tpu.core_type = #tpu.core_type<tc>, window_params = [{transform_indices = @transform_0, window_bounds = array<i64: 16, 128>}, {transform_indices = @transform_1, window_bounds = array<i64: 1, 128>}, {transform_indices = @transform_2, window_bounds = array<i64: 1, 128>}, {transform_indices = @transform_3, window_bounds = array<i64: 16, 128>}]} {
    %cst = arith.constant 0.000000e+00 : f32
    %0 = vector.broadcast %cst : f32 to vector<1x128xf32>
    %c0_i32 = arith.constant 0 : i32
    %c16_i32 = arith.constant 16 : i32
    %1 = arith.muli %c0_i32, %c16_i32 : i32
    %2 = tpu.assume_multiple %1, 16 : i32
    %3 = arith.index_cast %2 : i32 to index
    %c0 = arith.constant 0 : index
    %4 = vector.load %arg1[%3, %c0] : memref<16x128xf32, #tpu.memory_space<vmem>>, vector<16x128xf32>
    %cst_0 = arith.constant dense<0.000000e+00> : vector<128xf32>
    %5 = vector.multi_reduction <add>, %4, %cst_0 [0] : vector<16x128xf32> to vector<128xf32>
    %6 = vector.shape_cast %5 : vector<128xf32> to vector<1x128xf32>
    %7 = arith.addf %0, %6 : vector<1x128xf32>
    %c1_i32 = arith.constant 1 : i32
    %8 = vector.extract_strided_slice %7 {offsets = [0, 0], sizes = [1, 32], strides = [1, 1]} : vector<1x128xf32> to vector<1x32xf32>
    %9 = vector.extract_strided_slice %7 {offsets = [0, 32], sizes = [1, 32], strides = [1, 1]} : vector<1x128xf32> to vector<1x32xf32>
    %10 = arith.addf %8, %9 : vector<1x32xf32>
    %11 = vector.extract_strided_slice %7 {offsets = [0, 64], sizes = [1, 32], strides = [1, 1]} : vector<1x128xf32> to vector<1x32xf32>
    %12 = arith.addf %10, %11 : vector<1x32xf32>
    %13 = vector.extract_strided_slice %7 {offsets = [0, 96], sizes = [1, 32], strides = [1, 1]} : vector<1x128xf32> to vector<1x32xf32>
    %14 = arith.addf %12, %13 : vector<1x32xf32>
    %15 = tpu.concatenate %14, %14, %14, %14 in 1 : vector<1x32xf32>, vector<1x32xf32>, vector<1x32xf32>, vector<1x32xf32> -> vector<1x128xf32>
    %cst_1 = arith.constant 1.562500e-02 : f32
    %16 = vector.broadcast %cst_1 : f32 to vector<1x128xf32>
    %17 = arith.mulf %15, %16 : vector<1x128xf32>
    %cst_2 = arith.constant 0.000000e+00 : f32
    %18 = vector.broadcast %cst_2 : f32 to vector<1x128xf32>
    %c0_i32_3 = arith.constant 0 : i32
    %c16_i32_4 = arith.constant 16 : i32
    %19 = arith.muli %c0_i32_3, %c16_i32_4 : i32
    %20 = tpu.assume_multiple %19, 16 : i32
    %21 = arith.index_cast %20 : i32 to index
    %c0_5 = arith.constant 0 : index
    %22 = vector.load %arg1[%21, %c0_5] : memref<16x128xf32, #tpu.memory_space<vmem>>, vector<16x128xf32>
    %23 = vector.broadcast %17 : vector<1x128xf32> to vector<16x128xf32>
    %24 = arith.subf %22, %23 : vector<16x128xf32>
    %25 = arith.mulf %24, %24 : vector<16x128xf32>
    %cst_6 = arith.constant dense<0.000000e+00> : vector<128xf32>
    %26 = vector.multi_reduction <add>, %25, %cst_6 [0] : vector<16x128xf32> to vector<128xf32>
    %27 = vector.shape_cast %26 : vector<128xf32> to vector<1x128xf32>
    %28 = arith.addf %18, %27 : vector<1x128xf32>
    %c1_i32_7 = arith.constant 1 : i32
    %29 = vector.extract_strided_slice %28 {offsets = [0, 0], sizes = [1, 32], strides = [1, 1]} : vector<1x128xf32> to vector<1x32xf32>
    %30 = vector.extract_strided_slice %28 {offsets = [0, 32], sizes = [1, 32], strides = [1, 1]} : vector<1x128xf32> to vector<1x32xf32>
    %31 = arith.addf %29, %30 : vector<1x32xf32>
    %32 = vector.extract_strided_slice %28 {offsets = [0, 64], sizes = [1, 32], strides = [1, 1]} : vector<1x128xf32> to vector<1x32xf32>
    %33 = arith.addf %31, %32 : vector<1x32xf32>
    %34 = vector.extract_strided_slice %28 {offsets = [0, 96], sizes = [1, 32], strides = [1, 1]} : vector<1x128xf32> to vector<1x32xf32>
    %35 = arith.addf %33, %34 : vector<1x32xf32>
    %36 = tpu.concatenate %35, %35, %35, %35 in 1 : vector<1x32xf32>, vector<1x32xf32>, vector<1x32xf32>, vector<1x32xf32> -> vector<1x128xf32>
    %cst_8 = arith.constant 1.562500e-02 : f32
    %37 = vector.broadcast %cst_8 : f32 to vector<1x128xf32>
    %38 = arith.mulf %36, %37 : vector<1x128xf32>
    %cst_9 = arith.constant 9.99999974E-6 : f32
    %39 = vector.broadcast %cst_9 : f32 to vector<1x128xf32>
    %40 = arith.addf %38, %39 : vector<1x128xf32>
    %41 = math.rsqrt %40 : vector<1x128xf32>
    %c0_10 = arith.constant 0 : index
    %c0_11 = arith.constant 0 : index
    %42 = vector.load %arg2[%c0_10, %c0_11] : memref<1x128xf32, #tpu.memory_space<vmem>>, vector<1x128xf32>
    %43 = arith.mulf %42, %41 : vector<1x128xf32>
    %c0_12 = arith.constant 0 : index
    %c0_13 = arith.constant 0 : index
    %44 = vector.load %arg3[%c0_12, %c0_13] : memref<1x128xf32, #tpu.memory_space<vmem>>, vector<1x128xf32>
    %45 = arith.mulf %17, %43 : vector<1x128xf32>
    %46 = arith.subf %44, %45 : vector<1x128xf32>
    %c0_i32_14 = arith.constant 0 : i32
    %c16_i32_15 = arith.constant 16 : i32
    %47 = arith.muli %c0_i32_14, %c16_i32_15 : i32
    %48 = tpu.assume_multiple %47, 16 : i32
    %49 = arith.index_cast %48 : i32 to index
    %c0_16 = arith.constant 0 : index
    %50 = vector.load %arg1[%49, %c0_16] : memref<16x128xf32, #tpu.memory_space<vmem>>, vector<16x128xf32>
    %51 = vector.broadcast %43 : vector<1x128xf32> to vector<16x128xf32>
    %52 = arith.mulf %50, %51 : vector<16x128xf32>
    %53 = vector.broadcast %46 : vector<1x128xf32> to vector<16x128xf32>
    %54 = arith.addf %52, %53 : vector<16x128xf32>
    %55 = arith.index_cast %48 : i32 to index
    %c0_17 = arith.constant 0 : index
    %56 = vector.load %arg4[%55, %c0_17] : memref<16x128xf32, #tpu.memory_space<vmem>>, vector<16x128xf32>
    tpu.vector_store %arg4[%55, %c0_17], %54 {strides = array<i32>} : memref<16x128xf32, #tpu.memory_space<vmem>>, vector<16x128xf32>,
    %c1_i32_18 = arith.constant 1 : i32
    return
  }
  func.func @transform_0(%arg0: i32) -> (i32, i32) {
    %c0_i32 = arith.constant 0 : i32
    %c0_i32_0 = arith.constant 0 : i32
    return %c0_i32, %arg0 : i32, i32
  }
  func.func @transform_1(%arg0: i32) -> (i32, i32) {
    %c0_i32 = arith.constant 0 : i32
    %c0_i32_0 = arith.constant 0 : i32
    return %c0_i32, %arg0 : i32, i32
  }
  func.func @transform_2(%arg0: i32) -> (i32, i32) {
    %c0_i32 = arith.constant 0 : i32
    %c0_i32_0 = arith.constant 0 : i32
    return %c0_i32, %arg0 : i32, i32
  }
  func.func @transform_3(%arg0: i32) -> (i32, i32) {
    %c0_i32 = arith.constant 0 : i32
    %c0_i32_0 = arith.constant 0 : i32
    return %c0_i32, %arg0 : i32, i32
  }
}

</mosaic_0001>

<bundles_post_ra>
// kernel: tpu_custom_call.1
= control target key start
LH: loop header
LB: loop body
LE: loop exit
PB: predicated region body
PF: predicated region fallthrough
CT: control target
= control target key end

     0   :  { %8 = vsyncpa [#allocation3], 0  ;;  %s302_s0 = inlined_call_operand.hbm [shape: f32[16,128], index: 0, kind: input, shape index: {}]   ;;  %s303_s1 = inlined_call_operand.vmem [shape: f32[1,128], index: 1, kind: input, shape index: {}]   ;;  %s304_s2 = inlined_call_operand.vmem [shape: f32[1,128], index: 2, kind: input, shape index: {}]   ;;  %s305_s3 = inlined_call_operand.hbm [shape: f32[16,128], index: 3, kind: output, shape index: {}]  }
   0x1   :  { %9 = vsyncpa [#allocation4], 0  ;;  %s211_s12 = smov [#allocation2]   ;;  %s163_s16 = scalar_lea.hbm %s302_s0, 256 }
   0x2   :  { %s15_s13 = sshll.u32 %s211_s12, 4  ;;  %p164_p0 = scmp.ne.s32.totalorder %s302_s0, %s163_s16  ;;  %s16_s13 = int_to_ptr.vmem [resolvable:$true] %s15_s13 }
   0x3   :  { %p167_p1 = scmp.lt.u32.totalorder %s163_s16, %s302_s0 }
   0x5   :  { %p169_p2 = pnand %p167_p1, %p164_p0 }
   0x7   :  { %172 = shalt.err (!%p169_p2)
}
   0x8   :  { %s173_s21 = scalar_lea.vmem %s16_s13, 256  ;;  %p178_p4 = scmp.lt.s32.totalorder %s16_s13, %s16_s13 }
   0x9   :  { %p174_p3 = scmp.ne.s32.totalorder %s16_s13, %s173_s21  ;;  %p179_p5 = scmp.lt.s32.totalorder %s173_s21, %s173_s21 }
   0xb   :  { %p180_p6 = por %p179_p5, %p178_p4 }
   0xd   :  { %p181_p7 = pnand %p180_p6, %p174_p3 }
   0xf   :  { %184 = shalt.err (!%p181_p7)
}
  0x10   :  { %s212_s22 = smov 128   ;;  %s213_s23 = smov 8  }
  0x11   :  { %21 = dma.hbm_to_vmem [thread:$0]  %s302_s0, 256, %s16_s13, [#allocation3], %s212_s22, %s212_s22, %s213_s23  }
  0x12   :  { %207 = dma.done.wait [#allocation3], 256  }
  0x13   :  { %208 = vsyncadd [#allocation3], 4294967040  ;;  %v253_v0 = vld [vmem:[#allocation2] sm:$0xff]  ;;  %v255_v1 = vld [vmem:[#allocation2 + $0x8] sm:$0xff]  ;;  %s214_s26 = smov 96   ;;  %s215_s27 = smov 32   ;;  %v69_v15 = vlaneseq }
  0x14   :  { %v31_v2 = vadd.f32 %v255_v1, %v253_v0  ;;  %s216_s0 = smov 64   ;;  %vm62_vm0 = vcmask 261120   ;;  %vm64_vm1 = vcmask 523264   ;;  %vm66_vm2 = vcmask 785408   ;;  %v114_v51 = vld [vmem:[%s303_s1] sm:$0x1] }
  0x15   :  { %v70_v17 = vshrl.u32 %v69_v15, 7  ;;  %v116_v54 = vld [vmem:[%s304_s2] sm:$0x1]  ;;  %s217_s5 = smov [#allocation5]  }
  0x16   :  { %v32_v3 = vrot.slane %v31_v2, 4  ;;  %s142_s6 = sshll.u32 %s217_s5, 4  ;;  %s143_s6 = int_to_ptr.vmem [resolvable:$true] %s142_s6 }
  0x17   :  { %v71_v21 = vsub.s32 0, %v70_v17  ;;  %s185_s1 = scalar_lea.vmem %s143_s6, 256  ;;  %p190_p9 = scmp.lt.s32.totalorder %s143_s6, %s143_s6 }
  0x18   :  { %v33_v4 = vadd.f32 %v32_v3, %v31_v2  ;;  %p186_p8 = scmp.ne.s32.totalorder %s143_s6, %s185_s1  ;;  %p191_p10 = scmp.lt.s32.totalorder %s185_s1, %s185_s1 }
  0x1a   :  { %v34_v5 = vrot.slane %v33_v4, 2  ;;  %p192_p11 = por %p191_p10, %p190_p9 }
  0x1c   :  { %v35_v6 = vadd.f32 %v34_v5, %v33_v4  ;;  %p193_p12 = pnand %p192_p11, %p186_p8 }
  0x1e   :  { %v36_v7 = vrot.slane %v35_v6, 1 }
  0x20   :  { %v37_v8 = vadd.f32 %v36_v7, %v35_v6 }
  0x22   :  { %40 = vrot.lane.b32.xlu0 %v37_v8, %s214_s26  ;;  %48 = vrot.lane.b32.xlu1 %v37_v8, %s215_s27 }
  0x26   :  { %44 = vrot.lane.b32.xlu0 %v37_v8, %s216_s0 }
  0x94   :  { %v41_v9 = vpop.permute.xlu0 %40  ;;  %v49_v12 = vpop.permute.xlu1 %48 }
  0x95   :  { %v43_v10 = vadd.f32 %v41_v9, %v37_v8 }
  0x98   :  { %v45_v11 = vpop.permute.xlu0 %44 }
  0x99   :  { %v47_v13 = vadd.f32 %v45_v11, %v43_v10 }
  0x9b   :  { %v51_v14 = vadd.f32 %v49_v12, %v47_v13 }
  0x9d   :  { %56 = vrot.lane.b32.xlu0 %v51_v14, %s216_s0  ;;  %53 = vrot.lane.b32.xlu1 %v51_v14, %s215_s27 }
  0xa1   :  { %59 = vrot.lane.b32.xlu1 %v51_v14, %s214_s26 }
 0x10f   :  { %v54_v16 = vpop.permute.xlu1 %53  ;;  %v57_v18 = vpop.permute.xlu0 %56 }
 0x110   :  { %v63_v19 = vsel %vm62_vm0, %v51_v14, %v54_v16 }
 0x111   :  { %v65_v20 = vsel %vm64_vm1, %v63_v19, %v57_v18 }
 0x113   :  { %v60_v22 = vpop.permute.xlu1 %59 }
 0x114   :  { %v67_v23 = vsel %vm66_vm2, %v65_v20, %v60_v22 }
 0x115   :  { %v68_v24 = vmul.f32 0.015625, %v67_v23 }
 0x117   :  { %v72_v25 = vrot.slane %v68_v24, %v71_v21 }
 0x119   :  { %v73_v26 = vsub.f32 %v253_v0, %v72_v25  ;;  %v74_v27 = vsub.f32 %v255_v1, %v72_v25 }
 0x11b   :  { %v75_v28 = vmul.f32 %v73_v26, %v73_v26  ;;  %v76_v29 = vmul.f32 %v74_v27, %v74_v27 }
 0x11d   :  { %v77_v30 = vadd.f32 %v76_v29, %v75_v28 }
 0x11f   :  { %v78_v31 = vrot.slane %v77_v30, 4 }
 0x121   :  { %v79_v32 = vadd.f32 %v78_v31, %v77_v30 }
 0x123   :  { %v80_v33 = vrot.slane %v79_v32, 2 }
 0x125   :  { %v81_v34 = vadd.f32 %v80_v33, %v79_v32 }
 0x127   :  { %v82_v35 = vrot.slane %v81_v34, 1 }
 0x129   :  { %v83_v36 = vadd.f32 %v82_v35, %v81_v34 }
 0x12b   :  { %90 = vrot.lane.b32.xlu1 %v83_v36, %s216_s0  ;;  %86 = vrot.lane.b32.xlu0 %v83_v36, %s214_s26 }
 0x12f   :  { %94 = vrot.lane.b32.xlu0 %v83_v36, %s215_s27 }
 0x19d   :  { %v87_v37 = vpop.permute.xlu0 %86  ;;  %v91_v39 = vpop.permute.xlu1 %90 }
 0x19e   :  { %v89_v38 = vadd.f32 %v87_v37, %v83_v36 }
 0x1a0   :  { %v93_v40 = vadd.f32 %v91_v39, %v89_v38 }
 0x1a1   :  { %v95_v41 = vpop.permute.xlu0 %94 }
 0x1a2   :  { %v97_v42 = vadd.f32 %v95_v41, %v93_v40 }
 0x1a4   :  { %102 = vrot.lane.b32.xlu0 %v97_v42, %s216_s0  ;;  %99 = vrot.lane.b32.xlu1 %v97_v42, %s215_s27 }
 0x1a8   :  { %105 = vrot.lane.b32.xlu1 %v97_v42, %s214_s26 }
 0x216   :  { %v100_v43 = vpop.permute.xlu1 %99  ;;  %v103_v44 = vpop.permute.xlu0 %102 }
 0x217   :  { %v108_v45 = vsel %vm62_vm0, %v97_v42, %v100_v43 }
 0x218   :  { %v109_v46 = vsel %vm64_vm1, %v108_v45, %v103_v44 }
 0x21a   :  { %v106_v47 = vpop.permute.xlu1 %105 }
 0x21b   :  { %v110_v48 = vsel %vm66_vm2, %v109_v46, %v106_v47 }
 0x21c   :  { %v111_v49 = vmul.f32 0.015625, %v110_v48 }
 0x21e   :  { %v112_v50 = vadd.f32 1e-05, %v111_v49 }
 0x220   :  { %161 = vrsqrt.f32 %v112_v50 }
 0x22a   :  { %v162_v52 = vpop.eup %161 }
 0x22b   :  { %v115_v53 = vmul.f32 %v162_v52, %v114_v51 }
 0x22d   :  { %v117_v55 = vmul.f32 %v115_v53, %v68_v24  ;;  %v123_v56 = vrot.slane %v115_v53, %v71_v21 }
 0x22f   :  { %v118_v57 = vsub.f32 %v116_v54, %v117_v55  ;;  %v125_v58 = vmul.f32 %v123_v56, %v253_v0  ;;  %v126_v59 = vmul.f32 %v123_v56, %v255_v1 }
 0x231   :  { %v131_v60 = vrot.slane %v118_v57, %v71_v21 }
 0x233   :  { %v133_v61 = vadd.f32 %v131_v60, %v125_v58  ;;  %v134_v62 = vadd.f32 %v131_v60, %v126_v59 }
 0x235   :  { %135 = vst [vmem:[#allocation5] sm:$0xff] %v133_v61  ;;  %136 = vst [vmem:[#allocation5 + $0x8] sm:$0xff] %v134_v62 }
 0x236   :  { %196 = shalt.err (!%p193_p12)
}
 0x237   :  { %s197_s8 = scalar_lea.hbm %s305_s3, 256 }
 0x238   :  { %p198_p13 = scmp.ne.s32.totalorder %s305_s3, %s197_s8  ;;  %p201_p0 = scmp.lt.u32.totalorder %s197_s8, %s305_s3 }
 0x23a   :  { %p203_p1 = pnand %p201_p0, %p198_p13 }
 0x23c   :  { %206 = shalt.err (!%p203_p1)
}
 0x23d   :  { %148 = dma.vmem_to_hbm [thread:$0]  %s143_s6, 256, %s305_s3, [#allocation4], %s212_s22, %s212_s22, %s213_s23  }
 0x23e   :  { %209 = dma.done.wait [#allocation4], 256  }
 0x23f   :  { %210 = vsyncadd [#allocation4], 4294967040 }
 0x240   :  { %152 = vsyncpa [#allocation3], 1 }
 0x241   :  { %153 = vsyncpa [#allocation4], 1 }

</bundles_post_ra>
